<compile_context>
chip_gen: v7x
topology: tpu7x:2x2x1
jax: 0.10.0
libtpu: 0.0.40
codegen_flags: <defaults>
</compile_context>

<pallas_src>
import functools

import jax
import jax.numpy as jnp
from jax import lax
from jax.experimental import pallas as pl
from jax.experimental.pallas import tpu as pltpu


def _sep_kernel_s1(x_ref, wdw_ref, bd_ref, o_ref, xpad_ref, acc_ref, *,
                   K, C_in, pad, H, W, H_out, W_out, bt, dot_dtype):
    """Stride-1 fast path; bt batches stacked per grid step.

    x_ref:    (bt*H, W*C_in)              lane-flattened NHWC batch stack (unpadded)
    wdw_ref:  (K*K, W_out*C_in)           depthwise weights pre-tiled over W_out
    bd_ref:   (W_out*C_in, W_out*C_out)   block-diagonal (kron) pointwise weights
    o_ref:    (bt*H_out, W_out*C_out)     lane-dense stacked output
    xpad_ref: (Hp, Wp*C_in)               VMEM scratch: zero-padded single-image tile
    acc_ref:  (bt*H_out, W_out*C_in)      VMEM scratch: stacked depthwise result
    """
    WoC = W_out * C_in

    # Zero the padded scratch once per grid step.  The border stays zero across the
    # per-batch loop (the interior is fully overwritten each iteration).  Do NOT gate
    # this behind program_id == 0: under ("parallel",) sharding each TensorCore owns
    # its own scratch and must zero it.
    xpad_ref[...] = jnp.zeros_like(xpad_ref)

    # Hoisted weight load + K*K tap broadcasts (JAX does not CSE broadcast_in_dim,
    # so these must live outside the batch loop).
    wdw = wdw_ref[...].astype(jnp.float32)                       # (K*K, WoC)
    taps = [jnp.broadcast_to(wdw[t], (H_out, WoC)) for t in range(K * K)]

    def batch_body(b, carry):
        # Fused zero-padding: interior store, border remains zero.
        row0 = pl.multiple_of(b * H, H)
        xpad_ref[pad:pad + H, pad * C_in:(pad + W) * C_in] = \
            x_ref[pl.ds(row0, H), :].astype(jnp.float32)
        xp = xpad_ref[...]                                       # (Hp, Wp*C_in)

        # Depthwise KxK conv: K*K contiguous shifted-window FMAs on the VPU.
        # Lane index = w*C_in + c, so tap (kh, kw) is the contiguous slice
        # rows [kh, kh+H_out), lanes [kw*C_in, kw*C_in + WoC).
        acc = xp[0:H_out, 0:WoC] * taps[0]
        for kh in range(K):
            for kw in range(K):
                t = kh * K + kw
                if t == 0:
                    continue
                acc = acc + xp[kh:kh + H_out, kw * C_in:kw * C_in + WoC] * taps[t]

        orow0 = pl.multiple_of(b * H_out, H_out)
        acc_ref[pl.ds(orow0, H_out), :] = acc
        return carry

    # fori_loop (not a Python for) keeps vreg live ranges bounded at larger bt;
    # unroll small trip counts for LLO scheduler visibility.
    lax.fori_loop(0, bt, batch_body, 0, unroll=(bt <= 8))

    # Single stacked MXU matmul for all bt batches:
    #   (bt*H_out, W_out*C_in) @ (W_out*C_in, W_out*C_out)
    # Operands cast to bf16 when the input is bf16 (f32 accumulate kept).
    lhs = acc_ref[...].astype(dot_dtype)
    rhs = bd_ref[...].astype(dot_dtype)
    out = jnp.dot(lhs, rhs, preferred_element_type=jnp.float32)
    o_ref[...] = out.astype(o_ref.dtype)


def _sep_kernel_generic(x_ref, wdw_ref, wpw_ref, o_ref, *, K, stride, H_out, W_out):
    """Generic (stride != 1 / wide-row) fallback.  Lane-dense output.

    x_ref:   (1, Hp, Wp, C_in)   padded NHWC tile
    wdw_ref: (K*K, C_in)
    wpw_ref: (C_in, C_out)
    o_ref:   (1, H_out, W_out*C_out)

    TODO(synk): lane-flatten this path ((W,C_in) -> lanes) and express the strided
    taps with strided pl.ds / pltpu.roll; the current (.., C_in=4) last dim fills
    only 4/128 lanes and the K=C_in matmul under-uses the MXU.
    """
    xb = x_ref[0]                                   # (Hp, Wp, C)
    C = xb.shape[-1]
    C_out = wpw_ref.shape[-1]

    acc = jnp.zeros((H_out, W_out, C), dtype=jnp.float32)
    for kh in range(K):
        for kw in range(K):
            win = lax.slice(
                xb,
                (kh, kw, 0),
                (kh + stride * (H_out - 1) + 1, kw + stride * (W_out - 1) + 1, C),
                (stride, stride, 1),
            )                                        # (H_out, W_out, C)
            acc = acc + win.astype(jnp.float32) * wdw_ref[kh * K + kw].astype(jnp.float32)

    out = jnp.dot(acc.reshape(H_out * W_out, C), wpw_ref[...].astype(jnp.float32),
                  preferred_element_type=jnp.float32)            # (H_out*W_out, C_out)
    o_ref[0] = out.reshape(H_out, W_out * C_out).astype(o_ref.dtype)


def separable_block_pallas(x_nchw, w_depthwise, w_pointwise, *,
                           padding=1, stride=1, batch_tile=None):
    """x_nchw: (B, C_in, H, W); w_depthwise: (C_in, 1, K, K); w_pointwise: (C_out, C_in, 1, 1)."""
    B, C_in, H, W = x_nchw.shape
    K = w_depthwise.shape[-1]
    C_out = w_pointwise.shape[0]

    H_out = (H + 2 * padding - K) // stride + 1
    W_out = (W + 2 * padding - K) // stride + 1
    Hp, Wp = H + 2 * padding, W + 2 * padding
    WoC, WoCout = W_out * C_in, W_out * C_out
    itemsize = jnp.dtype(x_nchw.dtype).itemsize

    # NCHW -> NHWC at the module boundary (disappears in a full NHWC pipeline).
    x_nhwc = jnp.transpose(x_nchw, (0, 2, 3, 1))

    # Weight reshapes (tiny, done once):
    #  depthwise (C_in,1,K,K) -> (K*K, C_in); pointwise (C_out,C_in,1,1) -> (C_in, C_out)
    wdw_taps = jnp.transpose(w_depthwise[:, 0, :, :].reshape(C_in, K * K), (1, 0)).astype(jnp.float32)
    wpw = jnp.transpose(w_pointwise[:, :, 0, 0], (1, 0)).astype(jnp.float32)

    # Fast-path gate: kron(I_Wout, Wpw) is free only while K/N fit one native MXU
    # tile (128 on v5e; 256 on v6e/v7x -- conservative portable bound used here).
    MXU_TILE = 128
    fast = (stride == 1) and (WoC <= MXU_TILE) and (WoCout <= MXU_TILE)

    if fast:
        # --- batch-tile selection ---------------------------------------------
        if batch_tile is not None and batch_tile > 0 and B % batch_tile == 0:
            bt = batch_tile
        elif B >= 2:
            # Keep >= 2 grid steps so both v7x TensorCores get work under the
            # "parallel" batch axis, otherwise pack as much as possible per step.
            bt = max(1, B // 2)
            while B % bt:
                bt -= 1
        else:
            bt = B
        n_steps = B // bt

        x_flat = x_nhwc.reshape(B * H, W * C_in)                    # lane-dense input
        wdw_tiled = jnp.tile(wdw_taps, (1, W_out))                  # (K*K, WoC)
        bd = jnp.kron(jnp.eye(W_out, dtype=jnp.float32), wpw)       # (WoC, WoCout)

        dot_dtype = jnp.bfloat16 if x_nchw.dtype == jnp.bfloat16 else jnp.float32

        # Accurate (kron-inflated) cost estimate so XLA schedules the boundary
        # transposes around the call sensibly.
        flops = (2 * B * H_out * W_out * C_in * K * K        # depthwise VPU FMAs
                 + 2 * B * H_out * WoC * WoCout)              # stacked kron matmul
        bytes_accessed = (x_flat.size * itemsize
                          + K * K * WoC * 4 + WoC * WoCout * 4
                          + B * H_out * WoCout * itemsize)
        cost = pl.CostEstimate(flops=int(flops), transcendentals=0,
                               bytes_accessed=int(bytes_accessed))

        # Raise the scoped VMEM limit only when bt-sized (double-buffered) blocks
        # outgrow the default budget; cap at v7x's 64 MiB physical VMEM.
        vmem_est = (2 * bt * H * W * C_in * itemsize            # input blocks (2x buf)
                    + 2 * bt * H_out * WoCout * itemsize        # output blocks (2x buf)
                    + 2 * (K * K * WoC + WoC * WoCout) * 4      # weight blocks
                    + (Hp * Wp * C_in + bt * H_out * WoC) * 4)  # scratch
        vmem_limit = None
        if vmem_est > 12 * 1024 * 1024:
            vmem_limit = int(min(2 * vmem_est, 64 * 1024 * 1024))

        kernel = functools.partial(
            _sep_kernel_s1, K=K, C_in=C_in, pad=padding, H=H, W=W,
            H_out=H_out, W_out=W_out, bt=bt, dot_dtype=dot_dtype)

        out2d = pl.pallas_call(
            kernel,
            out_shape=jax.ShapeDtypeStruct((B * H_out, WoCout), x_nchw.dtype),
            grid_spec=pltpu.PrefetchScalarGridSpec(
                num_scalar_prefetch=0,
                grid=(n_steps,),
                in_specs=[
                    pl.BlockSpec((bt * H, W * C_in), lambda i: (i, 0)),
                    pl.BlockSpec((K * K, WoC), lambda i: (0, 0)),
                    pl.BlockSpec((WoC, WoCout), lambda i: (0, 0)),
                ],
                out_specs=pl.BlockSpec((bt * H_out, WoCout), lambda i: (i, 0)),
                scratch_shapes=[
                    pltpu.VMEM((Hp, Wp * C_in), jnp.float32),
                    pltpu.VMEM((bt * H_out, WoC), jnp.float32),
                ],
            ),
            compiler_params=pltpu.CompilerParams(
                dimension_semantics=("parallel",),
                vmem_limit_bytes=vmem_limit),
            cost_estimate=cost,
        )(x_flat, wdw_tiled, bd)

        out_nhwc = out2d.reshape(B, H_out, W_out, C_out)
    else:
        x_pad = jnp.pad(x_nhwc, ((0, 0), (padding, padding), (padding, padding), (0, 0)))
        flops = (2 * B * H_out * W_out * C_in * K * K
                 + 2 * B * H_out * W_out * C_in * C_out)
        bytes_accessed = (x_pad.size * itemsize
                          + K * K * C_in * 4 + C_in * C_out * 4
                          + B * H_out * WoCout * itemsize)
        cost = pl.CostEstimate(flops=int(flops), transcendentals=0,
                               bytes_accessed=int(bytes_accessed))

        kernel = functools.partial(_sep_kernel_generic, K=K, stride=stride,
                                   H_out=H_out, W_out=W_out)
        out3d = pl.pallas_call(
            kernel,
            out_shape=jax.ShapeDtypeStruct((B, H_out, WoCout), x_nchw.dtype),
            grid_spec=pltpu.PrefetchScalarGridSpec(
                num_scalar_prefetch=0,
                grid=(B,),
                in_specs=[
                    pl.BlockSpec((1, Hp, Wp, C_in), lambda b: (b, 0, 0, 0)),
                    pl.BlockSpec((K * K, C_in), lambda b: (0, 0)),
                    pl.BlockSpec((C_in, C_out), lambda b: (0, 0)),
                ],
                out_specs=pl.BlockSpec((1, H_out, WoCout), lambda b: (b, 0, 0)),
            ),
            compiler_params=pltpu.CompilerParams(dimension_semantics=("parallel",)),
            cost_estimate=cost,
        )(x_pad, wdw_taps, wpw)
        out_nhwc = out3d.reshape(B, H_out, W_out, C_out)

    # NHWC -> NCHW (PyTorch output convention).
    return jnp.transpose(out_nhwc, (0, 3, 1, 2))


def _reference(x_nchw, w_depthwise, w_pointwise, *, padding=1, stride=1):
    C_in = x_nchw.shape[1]
    dw = lax.conv_general_dilated(
        x_nchw, w_depthwise,
        window_strides=(stride, stride),
        padding=[(padding, padding), (padding, padding)],
        dimension_numbers=("NCHW", "OIHW", "NCHW"),
        feature_group_count=C_in,
    )
    pw = lax.conv_general_dilated(
        dw, w_pointwise,
        window_strides=(1, 1),
        padding=[(0, 0), (0, 0)],
        dimension_numbers=("NCHW", "OIHW", "NCHW"),
    )
    return pw


if __name__ == "__main__":
    B, C_in, C_out, H, W, K = 2, 4, 8, 16, 16, 3
    padding, stride = 1, 1

    key = jax.random.PRNGKey(0)
    kx, kdw, kpw = jax.random.split(key, 3)
    x = jax.random.normal(kx, (B, C_in, H, W), dtype=jnp.float32)
    w_depthwise = jax.random.normal(kdw, (C_in, 1, K, K), dtype=jnp.float32) * 0.1
    w_pointwise = jax.random.normal(kpw, (C_out, C_in, 1, 1), dtype=jnp.float32) * 0.1

    out = separable_block_pallas(x, w_depthwise, w_pointwise,
                                 padding=padding, stride=stride)
    out = jax.block_until_ready(out)

    ref = _reference(x, w_depthwise, w_pointwise, padding=padding, stride=stride)
    assert out.shape == ref.shape, (out.shape, ref.shape)
    assert jnp.allclose(out, ref, atol=1e-4, rtol=1e-4), float(jnp.max(jnp.abs(out - ref)))

    print("KERNEL_OK")
</pallas_src>

<mosaic_0001>
module attributes {stable_mosaic.version = 11 : i64} {
  func.func @_sep_kernel_s1(%arg0: i32, %arg1: memref<16x64xf32, #tpu.memory_space<vmem>>, %arg2: memref<9x64xf32, #tpu.memory_space<vmem>>, %arg3: memref<64x128xf32, #tpu.memory_space<vmem>>, %arg4: memref<16x128xf32, #tpu.memory_space<vmem>>, %arg5: memref<18x72xf32, #tpu.memory_space<vmem>>, %arg6: memref<16x64xf32, #tpu.memory_space<vmem>>) attributes {dimension_semantics = [#tpu.dimension_semantics<parallel>], iteration_bounds = array<i64: 2>, scalar_prefetch = 0 : i64, scratch_operands = 2 : i64, tpu.core_type = #tpu.core_type<tc>, window_params = [{transform_indices = @transform_0, window_bounds = array<i64: 16, 64>}, {pipeline_mode = #tpu.pipeline_mode<synchronous>, transform_indices = @transform_1, window_bounds = array<i64: 9, 64>}, {pipeline_mode = #tpu.pipeline_mode<synchronous>, transform_indices = @transform_2, window_bounds = array<i64: 64, 128>}, {transform_indices = @transform_3, window_bounds = array<i64: 16, 128>}]} {
    %cst = arith.constant 0.000000e+00 : f32
    %0 = vector.broadcast %cst : f32 to vector<18x72xf32>
    %c0 = arith.constant 0 : index
    %c0_0 = arith.constant 0 : index
    %1 = vector.load %arg5[%c0, %c0_0] : memref<18x72xf32, #tpu.memory_space<vmem>>, vector<18x72xf32>
    tpu.vector_store %arg5[%c0, %c0_0], %0 {strides = array<i32>} : memref<18x72xf32, #tpu.memory_space<vmem>>, vector<18x72xf32>,
    %c0_1 = arith.constant 0 : index
    %c0_2 = arith.constant 0 : index
    %2 = vector.load %arg2[%c0_1, %c0_2] : memref<9x64xf32, #tpu.memory_space<vmem>>, vector<9x64xf32>
    %3 = vector.extract_strided_slice %2 {offsets = [0, 0], sizes = [1, 64], strides = [1, 1]} : vector<9x64xf32> to vector<1x64xf32>
    %4 = vector.shape_cast %3 : vector<1x64xf32> to vector<64xf32>
    %5 = vector.shape_cast %4 : vector<64xf32> to vector<1x64xf32>
    %6 = vector.broadcast %5 : vector<1x64xf32> to vector<16x64xf32>
    %7 = vector.extract_strided_slice %2 {offsets = [1, 0], sizes = [1, 64], strides = [1, 1]} : vector<9x64xf32> to vector<1x64xf32>
    %8 = vector.shape_cast %7 : vector<1x64xf32> to vector<64xf32>
    %9 = vector.shape_cast %8 : vector<64xf32> to vector<1x64xf32>
    %10 = vector.broadcast %9 : vector<1x64xf32> to vector<16x64xf32>
    %11 = vector.extract_strided_slice %2 {offsets = [2, 0], sizes = [1, 64], strides = [1, 1]} : vector<9x64xf32> to vector<1x64xf32>
    %12 = vector.shape_cast %11 : vector<1x64xf32> to vector<64xf32>
    %13 = vector.shape_cast %12 : vector<64xf32> to vector<1x64xf32>
    %14 = vector.broadcast %13 : vector<1x64xf32> to vector<16x64xf32>
    %15 = vector.extract_strided_slice %2 {offsets = [3, 0], sizes = [1, 64], strides = [1, 1]} : vector<9x64xf32> to vector<1x64xf32>
    %16 = vector.shape_cast %15 : vector<1x64xf32> to vector<64xf32>
    %17 = vector.shape_cast %16 : vector<64xf32> to vector<1x64xf32>
    %18 = vector.broadcast %17 : vector<1x64xf32> to vector<16x64xf32>
    %19 = vector.extract_strided_slice %2 {offsets = [4, 0], sizes = [1, 64], strides = [1, 1]} : vector<9x64xf32> to vector<1x64xf32>
    %20 = vector.shape_cast %19 : vector<1x64xf32> to vector<64xf32>
    %21 = vector.shape_cast %20 : vector<64xf32> to vector<1x64xf32>
    %22 = vector.broadcast %21 : vector<1x64xf32> to vector<16x64xf32>
    %23 = vector.extract_strided_slice %2 {offsets = [5, 0], sizes = [1, 64], strides = [1, 1]} : vector<9x64xf32> to vector<1x64xf32>
    %24 = vector.shape_cast %23 : vector<1x64xf32> to vector<64xf32>
    %25 = vector.shape_cast %24 : vector<64xf32> to vector<1x64xf32>
    %26 = vector.broadcast %25 : vector<1x64xf32> to vector<16x64xf32>
    %27 = vector.extract_strided_slice %2 {offsets = [6, 0], sizes = [1, 64], strides = [1, 1]} : vector<9x64xf32> to vector<1x64xf32>
    %28 = vector.shape_cast %27 : vector<1x64xf32> to vector<64xf32>
    %29 = vector.shape_cast %28 : vector<64xf32> to vector<1x64xf32>
    %30 = vector.broadcast %29 : vector<1x64xf32> to vector<16x64xf32>
    %31 = vector.extract_strided_slice %2 {offsets = [7, 0], sizes = [1, 64], strides = [1, 1]} : vector<9x64xf32> to vector<1x64xf32>
    %32 = vector.shape_cast %31 : vector<1x64xf32> to vector<64xf32>
    %33 = vector.shape_cast %32 : vector<64xf32> to vector<1x64xf32>
    %34 = vector.broadcast %33 : vector<1x64xf32> to vector<16x64xf32>
    %35 = vector.extract_strided_slice %2 {offsets = [8, 0], sizes = [1, 64], strides = [1, 1]} : vector<9x64xf32> to vector<1x64xf32>
    %36 = vector.shape_cast %35 : vector<1x64xf32> to vector<64xf32>
    %37 = vector.shape_cast %36 : vector<64xf32> to vector<1x64xf32>
    %38 = vector.broadcast %37 : vector<1x64xf32> to vector<16x64xf32>
    %c0_i32 = arith.constant 0 : i32
    %c16_i32 = arith.constant 16 : i32
    %39 = arith.muli %c0_i32, %c16_i32 : i32
    %40 = tpu.assume_multiple %39, 16 : i32
    %41 = arith.index_cast %40 : i32 to index
    %c0_3 = arith.constant 0 : index
    %42 = vector.load %arg1[%41, %c0_3] : memref<16x64xf32, #tpu.memory_space<vmem>>, vector<16x64xf32>
    %c1 = arith.constant 1 : index
    %c4 = arith.constant 4 : index
    %43 = vector.load %arg5[%c1, %c4] : memref<18x72xf32, #tpu.memory_space<vmem>>, vector<16x64xf32>
    tpu.vector_store %arg5[%c1, %c4], %42 {strides = array<i32>} : memref<18x72xf32, #tpu.memory_space<vmem>>, vector<16x64xf32>,
    %c0_4 = arith.constant 0 : index
    %c0_5 = arith.constant 0 : index
    %44 = vector.load %arg5[%c0_4, %c0_5] : memref<18x72xf32, #tpu.memory_space<vmem>>, vector<18x72xf32>
    %45 = vector.extract_strided_slice %44 {offsets = [0, 0], sizes = [16, 64], strides = [1, 1]} : vector<18x72xf32> to vector<16x64xf32>
    %46 = arith.mulf %45, %6 : vector<16x64xf32>
    %47 = vector.extract_strided_slice %44 {offsets = [0, 4], sizes = [16, 64], strides = [1, 1]} : vector<18x72xf32> to vector<16x64xf32>
    %48 = arith.mulf %47, %10 : vector<16x64xf32>
    %49 = arith.addf %46, %48 : vector<16x64xf32>
    %50 = vector.extract_strided_slice %44 {offsets = [0, 8], sizes = [16, 64], strides = [1, 1]} : vector<18x72xf32> to vector<16x64xf32>
    %51 = arith.mulf %50, %14 : vector<16x64xf32>
    %52 = arith.addf %49, %51 : vector<16x64xf32>
    %53 = vector.extract_strided_slice %44 {offsets = [1, 0], sizes = [16, 64], strides = [1, 1]} : vector<18x72xf32> to vector<16x64xf32>
    %54 = arith.mulf %53, %18 : vector<16x64xf32>
    %55 = arith.addf %52, %54 : vector<16x64xf32>
    %56 = vector.extract_strided_slice %44 {offsets = [1, 4], sizes = [16, 64], strides = [1, 1]} : vector<18x72xf32> to vector<16x64xf32>
    %57 = arith.mulf %56, %22 : vector<16x64xf32>
    %58 = arith.addf %55, %57 : vector<16x64xf32>
    %59 = vector.extract_strided_slice %44 {offsets = [1, 8], sizes = [16, 64], strides = [1, 1]} : vector<18x72xf32> to vector<16x64xf32>
    %60 = arith.mulf %59, %26 : vector<16x64xf32>
    %61 = arith.addf %58, %60 : vector<16x64xf32>
    %62 = vector.extract_strided_slice %44 {offsets = [2, 0], sizes = [16, 64], strides = [1, 1]} : vector<18x72xf32> to vector<16x64xf32>
    %63 = arith.mulf %62, %30 : vector<16x64xf32>
    %64 = arith.addf %61, %63 : vector<16x64xf32>
    %65 = vector.extract_strided_slice %44 {offsets = [2, 4], sizes = [16, 64], strides = [1, 1]} : vector<18x72xf32> to vector<16x64xf32>
    %66 = arith.mulf %65, %34 : vector<16x64xf32>
    %67 = arith.addf %64, %66 : vector<16x64xf32>
    %68 = vector.extract_strided_slice %44 {offsets = [2, 8], sizes = [16, 64], strides = [1, 1]} : vector<18x72xf32> to vector<16x64xf32>
    %69 = arith.mulf %68, %38 : vector<16x64xf32>
    %70 = arith.addf %67, %69 : vector<16x64xf32>
    %c16_i32_6 = arith.constant 16 : i32
    %71 = arith.muli %c0_i32, %c16_i32_6 : i32
    %72 = tpu.assume_multiple %71, 16 : i32
    %73 = arith.index_cast %72 : i32 to index
    %c0_7 = arith.constant 0 : index
    %74 = vector.load %arg6[%73, %c0_7] : memref<16x64xf32, #tpu.memory_space<vmem>>, vector<16x64xf32>
    tpu.vector_store %arg6[%73, %c0_7], %70 {strides = array<i32>} : memref<16x64xf32, #tpu.memory_space<vmem>>, vector<16x64xf32>,
    %c1_i32 = arith.constant 1 : i32
    %c0_8 = arith.constant 0 : index
    %c0_9 = arith.constant 0 : index
    %75 = vector.load %arg6[%c0_8, %c0_9] : memref<16x64xf32, #tpu.memory_space<vmem>>, vector<16x64xf32>
    %c0_10 = arith.constant 0 : index
    %c0_11 = arith.constant 0 : index
    %76 = vector.load %arg3[%c0_10, %c0_11] : memref<64x128xf32, #tpu.memory_space<vmem>>, vector<64x128xf32>
    %cst_12 = arith.constant dense<0.000000e+00> : vector<16x128xf32>
    %77 = tpu.matmul %75, %76, %cst_12 {dimension_numbers = #tpu.dot_dimension_numbers<[1], [0], [0], [1], [0, 0, 1, 1], [], []>} : vector<16x64xf32>, vector<64x128xf32>, vector<16x128xf32> -> vector<16x128xf32>
    %c0_13 = arith.constant 0 : index
    %c0_14 = arith.constant 0 : index
    %78 = vector.load %arg4[%c0_13, %c0_14] : memref<16x128xf32, #tpu.memory_space<vmem>>, vector<16x128xf32>
    tpu.vector_store %arg4[%c0_13, %c0_14], %77 {strides = array<i32>} : memref<16x128xf32, #tpu.memory_space<vmem>>, vector<16x128xf32>,
    return
  }
  func.func @transform_0(%arg0: i32) -> (i32, i32) {
    %c0_i32 = arith.constant 0 : i32
    %c0_i32_0 = arith.constant 0 : i32
    return %arg0, %c0_i32 : i32, i32
  }
  func.func @transform_1(%arg0: i32) -> (i32, i32) {
    %c0_i32 = arith.constant 0 : i32
    %c0_i32_0 = arith.constant 0 : i32
    %c0_i32_1 = arith.constant 0 : i32
    return %c0_i32, %c0_i32_0 : i32, i32
  }
  func.func @transform_2(%arg0: i32) -> (i32, i32) {
    %c0_i32 = arith.constant 0 : i32
    %c0_i32_0 = arith.constant 0 : i32
    %c0_i32_1 = arith.constant 0 : i32
    return %c0_i32, %c0_i32_0 : i32, i32
  }
  func.func @transform_3(%arg0: i32) -> (i32, i32) {
    %c0_i32 = arith.constant 0 : i32
    %c0_i32_0 = arith.constant 0 : i32
    return %arg0, %c0_i32 : i32, i32
  }
}

</mosaic_0001>

<bundles_post_ra>
// kernel: tpu_custom_call.1
= control target key start
LH: loop header
LB: loop body
LE: loop exit
PB: predicated region body
PF: predicated region fallthrough
CT: control target
= control target key end

     0   :  { %8 = vsyncpa [#allocation5], 0  ;;  %s1284_s0 = inlined_call_operand.hbm [shape: f32[32,64], index: 0, kind: input, shape index: {}]   ;;  %s1285_s1 = inlined_call_operand.hbm [shape: f32[9,64], index: 1, kind: input, shape index: {}]   ;;  %s1286_s2 = inlined_call_operand.hbm [shape: f32[64,128], index: 2, kind: input, shape index: {}]   ;;  %s1287_s3 = inlined_call_operand.hbm [shape: f32[32,128], index: 3, kind: output, shape index: {}]  }
   0x1   :  { %10 = vsyncpa [#allocation5 + $0x1], 0 }
   0x2   :  { %11 = vsyncpa [#allocation8], 0 }
   0x3   :  { %12 = vsyncpa [#allocation6], 0 }
   0x4   :  { %14 = vsyncpa [#allocation6 + $0x1], 0  ;;  %s972_s12 = smov 0   ;;  %s974_s13 = smov 0  }
   0x5   :  { %s976_s14 = smov 0   ;;  %s978_s15 = smov 0  }
   0x6 LB: > { %s993_s16 = sadd.s32 4294967295, %s938_s15   ;;  %s639_s17 = sadd.s32 4294967294, %s938_s15   ;;  %s938_s15 = sphi %s978_s15, %s1307_s15   ;;  %s934_s14 = sphi %s976_s14, %s1306_s14   ;;  %s930_s13 = sphi %s974_s13, %s1305_s13   ;;  %s926_s12 = sphi %s972_s12, %s1304_s12  }
   0x7   : > { %p40_p0 = scmp.ne.s32.totalorder %s930_s13, %s926_s12  ;;  %p1288_p1 = scmp.eq.s32.totalorder %s993_s16, 0 }
   0x8   : > { %p112_p3 = scmp.eq.s32.totalorder %s639_s17, 1  ;;  %p640_p5 = scmp.ge.s32.totalorder %s938_s15, 1 }
   0x9   : > { %p1002_p4 = por %p1288_p1, %p40_p0  ;;  %p119_p7 = scmp.lt.s32.totalorder %s938_s15, 3 }
   0xa   : > { %p1007_p6 = por %p112_p3, %p40_p0  ;;  %s940_s21 = smov [#allocation7]  }
   0xb   : > { %s1291_s18 = scalar_select %p1002_p4, 1, 0 }
   0xc   : > { %s1292_s19 = scalar_select %p1007_p6, 1, 0 }
   0xd   : > { %p1012_p8 = pnand %p640_p5, %p119_p7  ;;  %s131_s22 = sshll.u32 %s940_s21, 4  ;;  %s1016_s22 = int_to_ptr.vmem [resolvable:$true] %s131_s22 }
   0xe   : > { %s941_s24 = smov [#allocation9]   ;;  %s782_s28 = scalar_lea.hbm %s1285_s1, 256 }
   0xf   : > { %p719_p9 = pneg %p1012_p8  ;;  %s144_s25 = sshll.u32 %s941_s24, 4  ;;  %s1027_s25 = int_to_ptr.vmem [resolvable:$true] %s144_s25 }
  0x10   : > { %p783_p12 = scmp.ne.s32.totalorder %s1285_s1, %s782_s28  ;;  %p789_p5 = scmp.lt.u32.totalorder %s782_s28, %s1285_s1 }
  0x11   : > { %p1023_p11 = pnand %p719_p9, %p1288_p1 }
  0x13   : > { %p784_p13 = pneg %p1023_p11 }
  0x15   : > { %p785_p0 = pnand %p784_p13, %p783_p12 }
  0x17   : > { %p786_p3 = pneg %p785_p0 }
  0x19   : > { %p791_p7 = pnand %p789_p5, %p786_p3 }
  0x1b   : > { %794 = shalt.err (!%p791_p7)
}
  0x1c   : > { %s795_s6 = scalar_lea.vmem %s1016_s22, 256  ;;  %p803_p2 = scmp.lt.s32.totalorder %s1016_s22, %s1016_s22 }
  0x1d   : > { %p796_p9 = scmp.ne.s32.totalorder %s1016_s22, %s795_s6  ;;  %p804_p12 = scmp.lt.s32.totalorder %s795_s6, %s795_s6 }
  0x1f   : > { %p798_p10 = pnand %p796_p9, %p784_p13  ;;  %p805_p0 = por %p804_p12, %p803_p2 }
  0x21   : > { %p799_p1 = pneg %p798_p10 }
  0x23   : > { %p806_p6 = pnand %p805_p0, %p799_p1 }
  0x25   : > { %809 = shalt.err (!%p806_p6)
}
  0x26   : > { %s942_s7 = smov 128   ;;  %s943_s8 = smov 8  }
  0x27   : > { %722 = dma.hbm_to_vmem [thread:$0]  (!%p1023_p11), %s1285_s1, 256, %s1016_s22, [#allocation8], %s942_s7, %s942_s7, %s943_s8  }
  0x28   : > { %s810_s21 = scalar_lea.hbm %s1286_s2, 1024 }
  0x29   : > { %p811_p1 = scmp.ne.s32.totalorder %s1286_s2, %s810_s21  ;;  %p817_p10 = scmp.lt.u32.totalorder %s810_s21, %s1286_s2 }
  0x2b   : > { %p813_p2 = pnand %p811_p1, %p784_p13 }
  0x2d   : > { %p814_p6 = pneg %p813_p2 }
  0x2f   : > { %p819_p3 = pnand %p817_p10, %p814_p6 }
  0x31   : > { %822 = shalt.err (!%p819_p3)
}
  0x32   : > { %s823_s22 = scalar_lea.vmem %s1027_s25, 1024  ;;  %p831_p12 = scmp.lt.s32.totalorder %s1027_s25, %s1027_s25 }
  0x33   : > { %p824_p5 = scmp.ne.s32.totalorder %s1027_s25, %s823_s22  ;;  %p832_p0 = scmp.lt.s32.totalorder %s823_s22, %s823_s22 }
  0x35   : > { %p826_p7 = pnand %p824_p5, %p784_p13  ;;  %p833_p1 = por %p832_p0, %p831_p12 }
  0x37   : > { %p827_p9 = pneg %p826_p7 }
  0x39   : > { %p834_p2 = pnand %p833_p1, %p827_p9 }
  0x3b   : > { %837 = shalt.err (!%p834_p2)
}
  0x3c   : > { %725 = dma.hbm_to_vmem [thread:$0]  (!%p1023_p11), %s1286_s2, 1024, %s1027_s25, [#allocation8], %s942_s7, %s942_s7, %s943_s8  }
  0x3d   : > { %s1088_s23 = sadd.s32 1, %s938_s15   ;;  %s27_s4 = sadd.s32 1, %s934_s14 }
  0x3e   : > { %s24_s5 = ssub.s32 %s938_s15, %s1088_s23  ;;  %p34_p13 = scmp.ne.s32.totalorder %s934_s14, %s930_s13 }
  0x3f   : > { %p25_p6 = scmp.eq.s32.totalorder %s24_s5, 0  ;;  %p35_p10 = scmp.eq.s32.totalorder %s938_s15, 0 }
  0x40   : > { %p1295_p3 = scmp.eq.s32.totalorder %s993_s16, 1  ;;  %p736_p7 = scmp.lt.s32.totalorder %s938_s15, 2 }
  0x41   : > { %s1104_s9 = scalar_select %p25_p6, %s934_s14, %s27_s4  }
  0x42   : > { %p1098_p5 = por %p1295_p3, %p34_p13  ;;  %p36_p9 = por %p35_p10, %p34_p13 }
  0x43   : > { %s158_s10 = sand.u32 1, %s934_s14   ;;  %s660_s25 = sshll.u32 %s938_s15, 8 }
  0x44   : > { %s1296_s6 = scalar_select %p1098_p5, 1, 0 }
  0x45   : > { %s644_s11 = sshll.u32 %s158_s10, 4  ;;  %s1111_s24 = scalar_lea.hbm %s1284_s0, %s660_s25 }
  0x46   : > { %s162_s26 = scalar_lea.vmem [#allocation4], %s644_s11  ;;  %p1115_p11 = pnand %p736_p7, %p36_p9 }
  0x47   : > { %s169_s27 = sshll.u32 %s162_s26, 4  ;;  %s1119_s22 = scalar_lea.sflag [#allocation5], %s158_s10  ;;  %s1113_s27 = int_to_ptr.vmem [resolvable:$true] %s169_s27 }
  0x48   : > { %s838_s29 = scalar_lea.hbm %s1111_s24, 256  ;;  %p840_p0 = pneg %p1115_p11 }
  0x49   : > { %p839_p12 = scmp.ne.s32.totalorder %s1111_s24, %s838_s29  ;;  %s843_s5 = scalar_lea.hbm %s1284_s0, 512 }
  0x4a   : > { %p844_p13 = scmp.lt.u32.totalorder %s1111_s24, %s1284_s0  ;;  %p845_p6 = scmp.lt.u32.totalorder %s843_s5, %s838_s29 }
  0x4b   : > { %p841_p1 = pnand %p840_p0, %p839_p12  ;;  %p847_p3 = scmp.lt.u32.totalorder %s838_s29, %s1111_s24 }
  0x4c   : > { %p846_p10 = por %p845_p6, %p844_p13 }
  0x4d   : > { %p842_p2 = pneg %p841_p1 }
  0x4e   : > { %p848_p7 = por %p847_p3, %p846_p10 }
  0x50   : > { %p849_p9 = pnand %p848_p7, %p842_p2 }
  0x52   : > { %852 = shalt.err (!%p849_p9)
}
  0x53   : > { %s853_s10 = scalar_lea.vmem %s1113_s27, 256  ;;  %s944_s17 = smov [#allocation4]  }
  0x54   : > { %p854_p12 = scmp.ne.s32.totalorder %s1113_s27, %s853_s10  ;;  %s858_s21 = sshll.u32 %s944_s17, 4  ;;  %s859_s21 = int_to_ptr.vmem [resolvable:$false] %s858_s21 }
  0x55   : > { %s860_s26 = scalar_lea.vmem %s859_s21, 512  ;;  %p861_p4 = scmp.lt.s32.totalorder %s1113_s27, %s859_s21 }
  0x56   : > { %p856_p1 = pnand %p854_p12, %p840_p0  ;;  %p862_p13 = scmp.lt.s32.totalorder %s860_s26, %s853_s10 }
  0x58   : > { %p857_p5 = pneg %p856_p1  ;;  %p863_p6 = por %p862_p13, %p861_p4 }
  0x5a   : > { %p864_p10 = pnand %p863_p6, %p857_p5 }
  0x5c   : > { %867 = shalt.err (!%p864_p10)
}
  0x5d   : > { %729 = dma.hbm_to_vmem [thread:$0]  (!%p1115_p11), %s1111_s24, 256, %s1113_s27, %s1119_s22, %s942_s7, %s942_s7, %s943_s8  }
  0x5e   : > { %181 = sbr.rel (%p1012_p8) target bundleno = 609 (0x261), region = 32  ;;  %s1153_s29 = sand.u32 (!%p1012_p8), 1, %s930_s13  }
  0x5f   : > { %s648_s30 = sshll.u32 (!%p1012_p8), %s1153_s29, 4  ;;  %s184_s4 = scalar_lea.sflag (!%p1012_p8), [#allocation5], %s1153_s29 }
  0x60   : > { %s187_s28 = scalar_lea.vmem (!%p1012_p8), [#allocation4], %s648_s30  ;;  %p1298_p4 = scmp.ne.s32.totalorder (!%p1012_p8), %s1291_s18, 0 }
  0x65   : > { %913 = dma.done.wait (%p1298_p4), %s184_s4, 256  }
  0x66   : > { %915 = vsyncadd (%p1298_p4), %s184_s4, 4294967040  ;;  %p1299_p5 = scmp.eq.s32.totalorder %s993_s16, 0 }
  0x68   : > { %917 = dma.done.wait (%p1299_p5), [#allocation8], 1280   ;;  %p1300_p8 = pmov %p1299_p5 }
  0x69   : > { %v227_v0 = vlaneseq  ;;  %vm220_vm0 = vcmask 588800   ;;  %v945_v1 = vmov 0.0   ;;  %vm223_vm1 = vcmask 582656   ;;  %v263_v8 = vld [vmem:[%s187_s28] sm:$0xff]  ;;  %s946_s18 = smov 4   ;;  %v264_v12 = vld [vmem:[%s187_s28 + $0x8] sm:$0xff] }
  0x6a   : > { %919 = vsyncadd (%p1300_p8), [#allocation8], 4294966016  ;;  %221 = vst.msk [vmem:[#allocation2] sm:$0xff] %vm220_vm0, %v945_v1  ;;  %v225_v9 = vld [vmem:[#allocation7] sm:$0xff]  ;;  %267 = vrot.lane.b32.xlu0 %v263_v8, %s946_s18  ;;  %s947_s20 = smov 8   ;;  %vm273_vm2 = vcmask 556064  }
  0x6b   : > { %222 = vst.msk [vmem:[#allocation2 + $0x8] sm:$0xff] %vm220_vm0, %v945_v1  ;;  %v228_v2 = vshrl.u32 %v227_v0, 7  ;;  %v652_v22 = vld [vmem:[#allocation7 + $0x8] ss:$0 sm:$0xff]  ;;  %s948_s7 = smov 124   ;;  %vm319_vm3 = vcmask 1046528  }
  0x6c   : > { %224 = vst.msk [vmem:[#allocation2 + $0x10] sm:$0x3] %vm223_vm1, %v945_v1  ;;  %s949_s8 = smov 120   ;;  %vm381_vm4 = vcmask 1045504   ;;  %v442_v53 = vld [vmem:[#allocation9] sm:$0xff]  ;;  %v443_v54 = vld [vmem:[#allocation9 + $0x8] sm:$0xff] }
  0x6d   : > { %v233_v3 = vsub.s32 1, %v228_v2  ;;  %v229_v4 = vsub.s32 0, %v228_v2  ;;  %v237_v5 = vsub.s32 2, %v228_v2  ;;  %v241_v6 = vsub.s32 3, %v228_v2  ;;  %v445_v8 = vld [vmem:[#allocation9 + $0x18] sm:$0xff]  ;;  %s217_s24 = scalar_lea.vmem [#allocation10], %s648_s30 }
  0x6e   : > { %v253_v7 = vsub.s32 6, %v228_v2  ;;  %v245_v11 = vsub.s32 4, %v228_v2  ;;  %v249_v17 = vsub.s32 5, %v228_v2  ;;  %269 = vrot.lane.b32.xlu0 %v264_v12, %s946_s18  ;;  %v257_v19 = vsub.s32 7, %v228_v2  ;;  %s547_s27 = sshll.u32 %s217_s24, 4  ;;  %s661_s22 = sshll.u32 %s993_s16, 8  ;;  %s1234_s27 = int_to_ptr.vmem [resolvable:$true] %s547_s27 }
  0x6f   : > { %v234_v10 = vrot.slane %v225_v9, %v233_v3  ;;  %v1167_v13 = vrot.slane %v225_v9, %v229_v4  ;;  %v1169_v14 = vrot.slane %v225_v9, %v241_v6  ;;  %v238_v16 = vrot.slane %v225_v9, %v237_v5  ;;  %s1239_s25 = scalar_lea.hbm %s1287_s3, %s661_s22  ;;  %s534_s10 = scalar_lea.sflag [#allocation6], %s1153_s29 }
  0x70   : > { %v1171_v15 = vrot.slane %v225_v9, %v253_v7  ;;  %v246_v18 = vrot.slane %v225_v9, %v245_v11  ;;  %v250_v20 = vrot.slane %v225_v9, %v249_v17  ;;  %v258_v21 = vrot.slane %v225_v9, %v257_v19  ;;  %v444_v7 = vld [vmem:[#allocation9 + $0x10] sm:$0xff]  ;;  %s868_s17 = scalar_lea.vmem %s1234_s27, 256  ;;  %p1301_p0 = scmp.ne.s32.totalorder %s1296_s6, 0 }
  0x71   : > { %282 = vrot.lane.b32.xlu1 %v234_v10, %s946_s18  ;;  %v691_v2 = vpack.c.bf16 %v443_v54, %v442_v53  ;;  %v695_v11 = vpack.c.bf16 %v445_v8, %v444_v7  ;;  %vm437_vm5 = vcmask 523264   ;;  %p869_p11 = scmp.ne.s32.totalorder %s1234_s27, %s868_s17  ;;  %s950_s16 = smov [#allocation10]  }
  0x72   : > { %330 = vrot.lane.b32.xlu0 %v246_v18, %s946_s18  ;;  %s872_s21 = sshll.u32 %s950_s16, 4  ;;  %s873_s21 = int_to_ptr.vmem [resolvable:$false] %s872_s21 }
  0x73   : > { %692 = vmatprep.subr.bf16.mxu0 %v691_v2  ;;  %p870_p2 = pnand %p869_p11, %p1301_p0  ;;  %s874_s26 = scalar_lea.vmem %s873_s21, 512 }
  0x74   : > { %694 = vmatpush3.bf16.msra.mxu0 %v691_v2  ;;  %p875_p7 = scmp.lt.s32.totalorder %s1234_s27, %s873_s21  ;;  %p876_p9 = scmp.lt.s32.totalorder %s874_s26, %s868_s17 }
  0x75   : > { %298 = vrot.lane.b32.xlu1 %v238_v16, %s947_s20  ;;  %696 = vmatprep.subr.bf16.mxu0 %v695_v11  ;;  %p871_p3 = pneg %p870_p2 }
  0x76   : > { %392 = vrot.lane.b32.xlu0 %v258_v21, %s946_s18  ;;  %p877_p12 = por %p876_p9, %p875_p7 }
  0x78   : > { %698 = vmatpush3.bf16.msra.mxu0 %v695_v11  ;;  %p878_p1 = pnand %p877_p12, %p871_p3 }
  0x79   : > { %353 = vrot.lane.b32.xlu1 %v250_v20, %s947_s20 }
  0x7d   : > { %415 = vrot.lane.b32.xlu1 %v652_v22, %s947_s20 }
  0xdc   : > { %v268_v23 = vpop.permute.xlu0 %267 }
  0xdd   : > { %274 = vst.msk [vmem:[#allocation2 + $0x1] sm:$0xff] %vm273_vm2, %v268_v23  ;;  %v446_v23 = vld [vmem:[#allocation9 + $0x20] sm:$0xff] }
  0xe0   : > { %v270_v25 = vpop.permute.xlu0 %269 }
  0xe1   : > { %275 = vst.msk [vmem:[#allocation2 + $0x9] sm:$0xff] %vm273_vm2, %v270_v25 }
  0xe3   : > { %v283_v24 = vpop.permute.xlu1 %282 }
  0xe4   : > { %v276_v27 = vld [vmem:[#allocation2] sm:$0xff]  ;;  %v331_v28 = vpop.permute.xlu0 %330 }
  0xe5   : > { %v285_v29 = vmul.f32 %v283_v24, %v276_v27  ;;  %v1177_v30 = vmul.f32 %v276_v27, %v1167_v13  ;;  %v313_v31 = vmul.f32 %v276_v27, %v1169_v14  ;;  %v1181_v32 = vmul.f32 %v276_v27, %v1171_v15 }
  0xe6   : > { %v333_v35 = vmul.f32 %v331_v28, %v276_v27 }
  0xe7   : > { %v299_v26 = vpop.permute.xlu1 %298  ;;  %289 = vrot.lane.b32.xlu0 %v285_v29, %s948_s7  ;;  %v320_v52 = vrot.slane %v313_v31, 1  ;;  %v382_v9 = vrot.slane %v1181_v32, 2 }
  0xe8   : > { %v277_v33 = vld [vmem:[#allocation2 + $0x8] sm:$0xff]  ;;  %v1184_v34 = vld [vmem:[#allocation2 + $0x10] sm:$0x3]  ;;  %v393_v37 = vpop.permute.xlu0 %392  ;;  %v301_v38 = vmul.f32 %v299_v26, %v276_v27  ;;  %v339_v45 = vrot.slane %v333_v35, 1 }
  0xe9   : > { %v334_v39 = vmul.f32 %v331_v28, %v277_v33  ;;  %v335_v41 = vmul.f32 %v331_v28, %v1184_v34  ;;  %v395_v44 = vmul.f32 %v393_v37, %v276_v27  ;;  %v1190_v46 = vmul.f32 %v393_v37, %v277_v33 }
  0xea   : > { %v286_v47 = vmul.f32 %v283_v24, %v277_v33  ;;  %v302_v48 = vmul.f32 %v299_v26, %v277_v33  ;;  %v1199_v60 = vmul.f32 %v277_v33, %v1167_v13  ;;  %v314_v61 = vmul.f32 %v277_v33, %v1169_v14  ;;  %v447_v24 = vld [vmem:[#allocation9 + $0x28] sm:$0xff]  ;;  %v448_v26 = vld [vmem:[#allocation9 + $0x30] sm:$0xff] }
  0xeb   : > { %v354_v36 = vpop.permute.xlu1 %353  ;;  %v340_v42 = vrot.slane %v334_v39, 1  ;;  %305 = vrot.lane.b32.xlu0 %v301_v38, %s949_s8  ;;  %v342_v55 = vrot.slane %v335_v41, 1  ;;  %v401_v58 = vrot.slane %v395_v44, 2  ;;  %v402_v59 = vrot.slane %v1190_v46, 2 }
  0xec   : > { %v1186_v40 = vmul.f32 %v354_v36, %v277_v33  ;;  %v356_v43 = vmul.f32 %v354_v36, %v276_v27  ;;  %v358_v56 = vmul.f32 %v354_v36, %v1184_v34  ;;  %291 = vrot.lane.b32.xlu1 %v286_v47, %s948_s7  ;;  %v315_v62 = vmul.f32 %v1184_v34, %v1169_v14 }
  0xed   : > { %v341_v51 = vsel %vm319_vm3, %v339_v45, %v340_v42  ;;  %v376_v1 = vmul.f32 %v277_v33, %v1171_v15  ;;  %v321_v4 = vrot.slane %v314_v61, 1  ;;  %v377_v6 = vmul.f32 %v1184_v34, %v1171_v15 }
  0xee   : > { %v363_v49 = vrot.slane %v1186_v40, 1  ;;  %v362_v57 = vrot.slane %v356_v43, 1  ;;  %v323_v5 = vrot.slane %v315_v62, 1  ;;  %v365_v16 = vrot.slane %v358_v56, 1 }
  0xef   : > { %v416_v50 = vpop.permute.xlu1 %415  ;;  %344 = vrot.lane.b32.xlu0 %v341_v51, %s948_s7  ;;  %v383_v10 = vrot.slane %v376_v1, 2  ;;  %v322_v12 = vsel %vm319_vm3, %v320_v52, %v321_v4  ;;  %v385_v14 = vrot.slane %v377_v6, 2  ;;  %v397_v17 = vmul.f32 %v393_v37, %v1184_v34 }
  0xf0   : > { %v418_v63 = vmul.f32 %v416_v50, %v276_v27  ;;  %v419_v0 = vmul.f32 %v416_v50, %v277_v33  ;;  %v364_v3 = vsel %vm319_vm3, %v362_v57, %v363_v49  ;;  %307 = vrot.lane.b32.xlu1 %v302_v48, %s949_s8  ;;  %v324_v13 = vsel %vm319_vm3, %v321_v4, %v323_v5  ;;  %v449_v27 = vld [vmem:[#allocation9 + $0x38] sm:$0xff] }
  0xf1   : > { %v384_v18 = vsel %vm381_vm4, %v382_v9, %v383_v10  ;;  %v343_v20 = vsel %vm319_vm3, %v340_v42, %v342_v55  ;;  %v403_v21 = vsel %vm381_vm4, %v401_v58, %v402_v59  ;;  %v386_v22 = vsel %vm381_vm4, %v383_v10, %v385_v14 }
  0xf2   : > { %v424_v15 = vrot.slane %v418_v63, 2  ;;  %v425_v19 = vrot.slane %v419_v0, 2  ;;  %v699_v25 = vpack.c.bf16 %v447_v24, %v446_v23  ;;  %v404_v28 = vrot.slane %v397_v17, 2 }
  0xf3   : > { %367 = vrot.lane.b32.xlu0 %v364_v3, %s949_s8  ;;  %v420_v29 = vmul.f32 %v416_v50, %v1184_v34  ;;  %v366_v31 = vsel %vm319_vm3, %v363_v49, %v365_v16  ;;  %v703_v33 = vpack.c.bf16 %v449_v27, %v448_v26 }
  0xf4   : > { %346 = vrot.lane.b32.xlu1 %v343_v20, %s948_s7  ;;  %v426_v32 = vsel %vm381_vm4, %v424_v15, %v425_v19  ;;  %700 = vmatprep.subr.bf16.mxu0 %v699_v25  ;;  %v405_v36 = vsel %vm381_vm4, %v402_v59, %v404_v28 }
  0xf5   : > { %702 = vmatpush3.bf16.msra.mxu0 %v699_v25  ;;  %v427_v35 = vrot.slane %v420_v29, 2 }
  0xf6   : > { %704 = vmatprep.subr.bf16.mxu0 %v703_v33 }
  0xf7   : > { %406 = vrot.lane.b32.xlu0 %v403_v21, %s948_s7  ;;  %v428_v34 = vsel %vm381_vm4, %v425_v19, %v427_v35 }
  0xf8   : > { %369 = vrot.lane.b32.xlu1 %v366_v31, %s949_s8 }
  0xf9   : > { %706 = vmatpush3.bf16.msra.mxu0 %v703_v33 }
  0xfb   : > { %429 = vrot.lane.b32.xlu0 %v426_v32, %s949_s8 }
  0xfc   : > { %408 = vrot.lane.b32.xlu1 %v405_v36, %s948_s7 }
 0x100   : > { %431 = vrot.lane.b32.xlu1 %v428_v34, %s949_s8 }
 0x159   : > { %v290_v37 = vpop.permute.xlu0 %289 }
 0x15a   : > { %v295_v38 = vadd.f32 %v290_v37, %v1177_v30 }
 0x15d   : > { %v306_v39 = vpop.permute.xlu0 %305 }
 0x15e   : > { %v311_v40 = vadd.f32 %v306_v39, %v295_v38  ;;  %v292_v42 = vpop.permute.xlu1 %291 }
 0x15f   : > { %v296_v44 = vadd.f32 %v292_v42, %v1199_v60 }
 0x160   : > { %v327_v41 = vadd.f32 %v322_v12, %v311_v40 }
 0x161   : > { %v345_v43 = vpop.permute.xlu0 %344 }
 0x162   : > { %v350_v45 = vadd.f32 %v345_v43, %v327_v41  ;;  %v308_v46 = vpop.permute.xlu1 %307 }
 0x163   : > { %v312_v48 = vadd.f32 %v308_v46, %v296_v44 }
 0x165   : > { %v368_v47 = vpop.permute.xlu0 %367  ;;  %v328_v50 = vadd.f32 %v324_v13, %v312_v48 }
 0x166   : > { %v373_v49 = vadd.f32 %v368_v47, %v350_v45  ;;  %v347_v52 = vpop.permute.xlu1 %346 }
 0x167   : > { %v351_v54 = vadd.f32 %v347_v52, %v328_v50 }
 0x168   : > { %v389_v51 = vadd.f32 %v384_v18, %v373_v49 }
 0x169   : > { %v407_v53 = vpop.permute.xlu0 %406 }
 0x16a   : > { %v412_v55 = vadd.f32 %v407_v53, %v389_v51  ;;  %v370_v56 = vpop.permute.xlu1 %369 }
 0x16b   : > { %v374_v57 = vadd.f32 %v370_v56, %v351_v54 }
 0x16d   : > { %v430_v30 = vpop.permute.xlu0 %429  ;;  %v390_v59 = vadd.f32 %v386_v22, %v374_v57 }
 0x16e   : > { %v435_v58 = vadd.f32 %v430_v30, %v412_v55  ;;  %v409_v60 = vpop.permute.xlu1 %408 }
 0x16f   : > { %v413_v61 = vadd.f32 %v409_v60, %v390_v59 }
 0x170   : > { %438 = vst.msk [vmem:[#allocation3] sm:$0xff] %vm437_vm5, %v435_v58 }
 0x172   : > { %v432_v62 = vpop.permute.xlu1 %431 }
 0x173   : > { %v436_v63 = vadd.f32 %v432_v62, %v413_v61 }
 0x175   : > { %439 = vst.msk [vmem:[#allocation3 + $0x8] sm:$0xff] %vm437_vm5, %v436_v63 }
 0x177   : > { %v440_v0 = vld [vmem:[#allocation3] sm:$0xff] }
 0x178   : > { %688 = vmatprep.mubr.msk.f32.mxu0 %vm437_vm5, %v440_v0 }
 0x17c   : > { %v441_v1 = vld [vmem:[#allocation3 + $0x8] sm:$0xff] }
 0x17d   : > { %689 = vmatmul.mubr.msk.f32.vlgmr.msra.gmra.mrb[0].mxu0 %vm437_vm5, %v441_v1 }
 0x250   : > { %v690_v2 = vpop.f32.mrb[0].mxu0 }
 0x251   : > { %532 = vst [vmem:[%s217_s24 + $0x8] sm:$0xff] %v690_v2  ;;  %v522_v3 = vpop.f32.mrb[1].mxu0 }
 0x252   : > { %531 = vst [vmem:[%s217_s24] sm:$0xff] %v522_v3 }
 0x253   : > { %881 = shalt.err (!%p878_p1)
}
 0x254   : > { %s882_s30 = scalar_lea.hbm %s1239_s25, 256  ;;  %s886_s18 = scalar_lea.hbm %s1287_s3, 512 }
 0x255   : > { %p883_p13 = scmp.ne.s32.totalorder %s1239_s25, %s882_s30  ;;  %p887_p4 = scmp.lt.u32.totalorder %s1239_s25, %s1287_s3 }
 0x256   : > { %p888_p5 = scmp.lt.u32.totalorder %s886_s18, %s882_s30  ;;  %p890_p11 = scmp.lt.u32.totalorder %s882_s30, %s1239_s25 }
 0x257   : > { %p884_p6 = pnand %p883_p13, %p1301_p0 }
 0x258   : > { %p889_p8 = por %p888_p5, %p887_p4 }
 0x259   : > { %p885_p10 = pneg %p884_p6 }
 0x25a   : > { %p891_p2 = por %p890_p11, %p889_p8 }
 0x25c   : > { %p892_p3 = pnand %p891_p2, %p885_p10 }
 0x25e   : > { %895 = shalt.err (!%p892_p3)
}
 0x25f   : > { %s951_s24 = smov 128  }
 0x260   : > { %717 = dma.vmem_to_hbm [thread:$0]  (%p1301_p0), %s1234_s27, 256, %s1239_s25, %s534_s10, %s951_s24, %s951_s24, %s947_s20  }
 0x261 PF: > { %s562_s22 = sand.u32 1, %s926_s12   ;;  %p1302_p7 = scmp.ne.s32.totalorder %s1292_s19, 0 }
 0x262   : > { %p1303_p9 = scmp.ge.s32.totalorder %s938_s15, 2  ;;  %s563_s5 = scalar_lea.sflag [#allocation6], %s562_s22 }
 0x264   : > { %p731_p12 = pnand %p1303_p9, %p1302_p7 }
 0x266   : > { %921 = dma.done.wait (!%p731_p12), %s563_s5, 256  }
 0x267   : > { %923 = vsyncadd (!%p731_p12), %s563_s5, 4294967040  ;;  %p17_p1 = scmp.ge.s32.totalorder %s1088_s23, 4   ;;  %s1304_s12 = smov %s930_s13 }
 0x268   : > { %s1305_s13 = smov %s934_s14  ;;  %s1306_s14 = smov %s1104_s9 }
 0x269   : > { %s1307_s15 = smov %s1088_s23  ;;  %19 = sbr.rel (!%p17_p1) target bundleno = 6 (0x6), region = 85 }
 0x270   :  { %568 = vsyncpa [#allocation5], 1 }
 0x271   :  { %570 = vsyncpa [#allocation5 + $0x1], 1 }
 0x272   :  { %571 = vsyncpa [#allocation8], 1 }
 0x273   :  { %572 = vsyncpa [#allocation6], 1 }
 0x274   :  { %574 = vsyncpa [#allocation6 + $0x1], 1 }

</bundles_post_ra>
